<compile_context>
chip_gen: v7x
topology: tpu7x:2x2x1
jax: 0.10.0
libtpu: 0.0.40
codegen_flags: <defaults>
</compile_context>

<pallas_src>
import functools

import jax
import jax.numpy as jnp
from jax import lax
from jax.experimental import pallas as pl
from jax.experimental.pallas import tpu as pltpu

ALPHA = 0.25
GAMMA = 2.0

LANES = 128
MAX_TILE_ROWS = 2048   # (2048, 128) f32 block = 1 MiB per input per buffer
STRIP_ROWS = 64        # 8 vregs per live value -> intermediates stay in vregs


def _round_up(x, m):
    return ((x + m - 1) // m) * m


@functools.lru_cache(maxsize=None)
def _tensorcores_per_chip() -> int:
    """1 on single-TC chips (v5e/v6e), 2 on v7x; falling back to 1 is always safe."""
    try:
        info = pltpu.get_tpu_info()
        for name in ("tensorcores_per_chip", "num_tensorcores",
                     "cores_per_chip", "num_cores"):
            n = getattr(info, name, None)
            if n is None:
                continue
            try:
                n = int(n)
            except Exception:
                continue
            if n in (1, 2):
                return n
    except Exception:
        pass
    try:
        kind = jax.devices()[0].device_kind.lower()
        if "v7" in kind:
            return 2
    except Exception:
        pass
    return 1


def _focal_elementwise(p, t, alpha, gamma, hard_labels):
    """Per-element focal loss, f32 in / f32 out.

    hard_labels=True assumes t in {0, 1}: one clamped log per element (single
    EUP push), bit-identical to the PyTorch module for hard labels.
    hard_labels=False reproduces nn.BCELoss's two-log form exactly (needed for
    soft labels).
    """
    if hard_labels:
        p_t = jnp.where(t >= 0.5, p, 1.0 - p)
        bce = -jnp.maximum(jnp.log(p_t), -100.0)
    else:
        # PyTorch BCELoss clamps each log at -100.  The clamp precedes the
        # multiply, so the (p=1, t=1) padding never produces 0 * -inf.
        log_p = jnp.maximum(jnp.log(p), -100.0)
        log_1mp = jnp.maximum(jnp.log(1.0 - p), -100.0)
        bce = -(t * log_p + (1.0 - t) * log_1mp)
        p_t = jnp.where(t == 1.0, p, 1.0 - p)
    m = 1.0 - p_t
    if gamma == 2.0:
        modulating = m * m          # VPU square, no EUP pow
    else:
        modulating = m ** gamma
    return alpha * modulating * bce


def _focal_sum_kernel(yp_ref, yt_ref, out_ref, *, alpha, gamma, hard_labels,
                      tile_rows, rows_slab, total_steps, steps_per_core,
                      need_row_mask):
    c = pl.program_id(0)            # parallel (core) axis
    i = pl.program_id(1)            # sequential reduction axis
    s = c * steps_per_core + i      # global row-tile index

    @pl.when(i == 0)
    def _():
        out_ref[...] = jnp.zeros_like(out_ref)

    def tile_partial(apply_row_mask):
        row_base = s * tile_rows

        def strip_partial(r0, strip_rows):
            # r0 / strip_rows are static Python ints -> static ref slices.
            p = yp_ref[pl.ds(r0, strip_rows), :].astype(jnp.float32)
            t = yt_ref[pl.ds(r0, strip_rows), :].astype(jnp.float32)
            if apply_row_mask:
                row = lax.broadcasted_iota(jnp.int32, (strip_rows, 1), 0)
                valid = (row_base + r0 + row) < rows_slab
                # (p=1, t=1) padding contributes exactly 0 loss.
                p = jnp.where(valid, p, 1.0)
                t = jnp.where(valid, t, 1.0)
            loss = _focal_elementwise(p, t, alpha, gamma, hard_labels)
            # Fold the strip into a vreg-shaped (8, 128) partial: pure VPU
            # adds; no (tile_rows, 128) intermediate ever lands in VMEM.
            return loss.reshape(strip_rows // 8, 8, LANES).sum(axis=0)

        acc = jnp.zeros((8, LANES), jnp.float32)
        n_full = tile_rows // STRIP_ROWS
        rem = tile_rows % STRIP_ROWS           # multiple of 8 by construction
        for j in range(n_full):                # static strip count
            acc = acc + strip_partial(j * STRIP_ROWS, STRIP_ROWS)
        if rem:
            acc = acc + strip_partial(n_full * STRIP_ROWS, rem)
        out_ref[...] += acc

    if need_row_mask:
        # Only the last real tile pays the iota/compare/select mask.
        @pl.when(s == total_steps - 1)
        def _():
            tile_partial(True)

        @pl.when(s != total_steps - 1)
        def _():
            tile_partial(False)
    else:
        tile_partial(False)


def focal_loss(y_pred, y_true, alpha=ALPHA, gamma=GAMMA, hard_labels=True,
               _max_tile_rows=MAX_TILE_ROWS):
    assert y_pred.shape == y_true.shape
    n_elems = int(y_pred.size)
    if n_elems == 0:
        return jnp.float32(0.0)

    # Keep the caller's dtype (bf16 welcome -> halves HBM reads); the in-kernel
    # cast to f32 is hidden under the DMA.
    flat_p = jnp.ravel(y_pred)
    flat_t = jnp.ravel(y_true)

    # Kernel handles whole (8, 128)-aligned rows only (lane-dense, no padding,
    # no oversized blocks); the small remainder goes to a pure-JAX epilogue.
    rows_slab = (n_elems // LANES // 8) * 8
    aligned = rows_slab * LANES
    tail = n_elems - aligned                   # < 1152 elements

    total = jnp.float32(0.0)

    if rows_slab > 0:
        slab_p = flat_p[:aligned].reshape(rows_slab, LANES)
        slab_t = flat_t[:aligned].reshape(rows_slab, LANES)

        tile_rows = min(_max_tile_rows, rows_slab)       # multiple of 8
        total_steps = pl.cdiv(rows_slab, tile_rows)

        # Parallel core split only where it helps: 1 stream on v5e/v6e, 2 on
        # v7x, and only when the step count splits evenly (no masked step, no
        # wasted tile DMA from a clamped index_map).
        num_cores = _tensorcores_per_chip()
        if num_cores > 1:
            if total_steps < num_cores:
                num_cores = 1
            elif total_steps % num_cores != 0:
                target_steps = _round_up(total_steps, num_cores)
                cand = _round_up(pl.cdiv(rows_slab, target_steps), 8)
                if pl.cdiv(rows_slab, cand) % num_cores == 0:
                    tile_rows = cand
                    total_steps = pl.cdiv(rows_slab, cand)
                else:
                    num_cores = 1
        steps_per_core = total_steps // num_cores

        need_row_mask = (rows_slab % tile_rows) != 0

        def in_index_map(c, i):
            return (c * steps_per_core + i, 0)

        kernel = functools.partial(
            _focal_sum_kernel, alpha=alpha, gamma=gamma,
            hard_labels=hard_labels, tile_rows=tile_rows, rows_slab=rows_slab,
            total_steps=total_steps, steps_per_core=steps_per_core,
            need_row_mask=need_row_mask)

        # TODO(synk): on v7x, if profiling shows both grid halves landing on
        # one TensorCore, switch the leading axis to pltpu.CORE_PARALLEL (or an
        # explicit pl.core_map over create_tensorcore_mesh); also worth
        # sweeping pipeline_mode=pl.Buffered(3) on the two in_specs.
        partials = pl.pallas_call(
            kernel,
            out_shape=jax.ShapeDtypeStruct((num_cores, 8, LANES), jnp.float32),
            grid_spec=pltpu.PrefetchScalarGridSpec(
                num_scalar_prefetch=0,
                grid=(num_cores, steps_per_core),
                in_specs=[
                    pl.BlockSpec((tile_rows, LANES), in_index_map),
                    pl.BlockSpec((tile_rows, LANES), in_index_map),
                ],
                out_specs=pl.BlockSpec((None, 8, LANES), lambda c, i: (c, 0, 0)),
            ),
            compiler_params=pltpu.CompilerParams(
                dimension_semantics=("parallel", "arbitrary")),
        )(slab_p, slab_t)

        total = total + jnp.sum(partials)

    if tail:
        tp = flat_p[aligned:].astype(jnp.float32)
        tt = flat_t[aligned:].astype(jnp.float32)
        total = total + jnp.sum(
            _focal_elementwise(tp, tt, alpha, gamma, hard_labels))

    return (total / n_elems).astype(jnp.float32)


def focal_loss_ref(y_pred, y_true, alpha=ALPHA, gamma=GAMMA):
    """Pure-JAX transliteration of the PyTorch module."""
    p = y_pred.astype(jnp.float32)
    t = y_true.astype(jnp.float32)
    bce = -(t * jnp.maximum(jnp.log(p), -100.0)
            + (1.0 - t) * jnp.maximum(jnp.log(1.0 - p), -100.0))
    p_t = jnp.where(t == 1.0, p, 1.0 - p)
    return jnp.mean(alpha * (1.0 - p_t) ** gamma * bce)


if __name__ == "__main__":
    key = jax.random.PRNGKey(0)
    k1, k2, k3, k4, k5, k6 = jax.random.split(key, 6)

    # y_pred: probabilities in (0, 1); y_true: hard 0/1 labels.  NCHW layout.
    shape = (2, 4, 16, 16)
    y_pred = jax.nn.sigmoid(jax.random.normal(k1, shape, dtype=jnp.float32))
    y_true = (jax.random.uniform(k2, shape) > 0.5).astype(jnp.float32)

    out = focal_loss(y_pred, y_true)                        # one-log fast path
    out_exact = focal_loss(y_pred, y_true, hard_labels=False)   # exact module
    jax.block_until_ready((out, out_exact))

    ref = focal_loss_ref(y_pred, y_true)
    assert jnp.allclose(out, ref, rtol=1e-5, atol=1e-6), (out, ref)
    assert jnp.allclose(out_exact, ref, rtol=1e-5, atol=1e-6), (out_exact, ref)

    # Odd size: everything lands in the pure-JAX tail epilogue.
    shape2 = (3, 5, 7, 9)
    yp2 = jax.nn.sigmoid(jax.random.normal(k3, shape2, dtype=jnp.float32))
    yt2 = (jax.random.uniform(k4, shape2) > 0.5).astype(jnp.float32)
    out2 = focal_loss(yp2, yt2)
    jax.block_until_ready(out2)
    assert jnp.allclose(out2, focal_loss_ref(yp2, yt2), rtol=1e-5, atol=1e-6)

    # Multi-tile grid + masked last tile + tail, via a small forced tile size.
    shape3 = (2, 4, 24, 65)
    yp3 = jax.nn.sigmoid(jax.random.normal(k5, shape3, dtype=jnp.float32))
    yt3 = (jax.random.uniform(k6, shape3) > 0.5).astype(jnp.float32)
    out3 = focal_loss(yp3, yt3, _max_tile_rows=40)
    jax.block_until_ready(out3)
    assert jnp.allclose(out3, focal_loss_ref(yp3, yt3), rtol=1e-5, atol=1e-6)

    print("KERNEL_OK")
</pallas_src>

<mosaic_0001>
module attributes {stable_mosaic.version = 11 : i64} {
  func.func @_focal_sum_kernel(%arg0: i32, %arg1: i32, %arg2: memref<16x128xf32, #tpu.memory_space<vmem>>, %arg3: memref<16x128xf32, #tpu.memory_space<vmem>>, %arg4: memref<1x8x128xf32, #tpu.memory_space<vmem>>) attributes {dimension_semantics = [#tpu.dimension_semantics<parallel>, #tpu.dimension_semantics<arbitrary>], iteration_bounds = array<i64: 1, 1>, scalar_prefetch = 0 : i64, scratch_operands = 0 : i64, tpu.core_type = #tpu.core_type<tc>, window_params = [{transform_indices = @transform_0, window_bounds = array<i64: 16, 128>}, {transform_indices = @transform_1, window_bounds = array<i64: 16, 128>}, {transform_indices = @transform_2, window_bounds = array<i64: 1, 8, 128>}]} {
    %c0_i32 = arith.constant 0 : i32
    %0 = arith.cmpi eq, %arg1, %c0_i32 : i32
    %1 = arith.extui %0 : i1 to i32
    %c0_i32_0 = arith.constant 0 : i32
    %2 = arith.cmpi ne, %1, %c0_i32_0 : i32
    scf.if %2 {
      %cst_17 = arith.constant 0.000000e+00 : f32
      %31 = vector.broadcast %cst_17 : f32 to vector<8x128xf32>
      %c0_18 = arith.constant 0 : index
      %c0_19 = arith.constant 0 : index
      %c0_20 = arith.constant 0 : index
      %32 = vector.load %arg4[%c0_18, %c0_19, %c0_20] : memref<1x8x128xf32, #tpu.memory_space<vmem>>, vector<1x8x128xf32>
      %33 = vector.shape_cast %32 : vector<1x8x128xf32> to vector<8x128xf32>
      %34 = vector.shape_cast %31 : vector<8x128xf32> to vector<1x8x128xf32>
      tpu.vector_store %arg4[%c0_18, %c0_19, %c0_20], %34 {strides = array<i32>} : memref<1x8x128xf32, #tpu.memory_space<vmem>>, vector<1x8x128xf32>,
    } else {
    }
    %cst = arith.constant 0.000000e+00 : f32
    %3 = vector.broadcast %cst : f32 to vector<8x128xf32>
    %c0 = arith.constant 0 : index
    %c0_1 = arith.constant 0 : index
    %4 = vector.load %arg2[%c0, %c0_1] : memref<16x128xf32, #tpu.memory_space<vmem>>, vector<16x128xf32>
    %c0_2 = arith.constant 0 : index
    %c0_3 = arith.constant 0 : index
    %5 = vector.load %arg3[%c0_2, %c0_3] : memref<16x128xf32, #tpu.memory_space<vmem>>, vector<16x128xf32>
    %cst_4 = arith.constant 5.000000e-01 : f32
    %6 = vector.broadcast %cst_4 : f32 to vector<16x128xf32>
    %7 = arith.cmpf oge, %5, %6 : vector<16x128xf32>
    %cst_5 = arith.constant 1.000000e+00 : f32
    %8 = vector.broadcast %cst_5 : f32 to vector<16x128xf32>
    %9 = arith.subf %8, %4 : vector<16x128xf32>
    %10 = arith.select %7, %4, %9 : vector<16x128xi1>, vector<16x128xf32>
    %11 = math.log %10 : vector<16x128xf32>
    %cst_6 = arith.constant -1.000000e+02 : f32
    %12 = vector.broadcast %cst_6 : f32 to vector<16x128xf32>
    %13 = arith.maximumf %11, %12 : vector<16x128xf32>
    %cst_7 = arith.constant 0.000000e+00 : f32
    %14 = vector.broadcast %cst_7 : f32 to vector<16x128xf32>
    %15 = arith.subf %14, %13 : vector<16x128xf32>
    %cst_8 = arith.constant 1.000000e+00 : f32
    %16 = vector.broadcast %cst_8 : f32 to vector<16x128xf32>
    %17 = arith.subf %16, %10 : vector<16x128xf32>
    %18 = arith.mulf %17, %17 : vector<16x128xf32>
    %cst_9 = arith.constant 2.500000e-01 : f32
    %19 = vector.broadcast %cst_9 : f32 to vector<16x128xf32>
    %20 = arith.mulf %19, %18 : vector<16x128xf32>
    %21 = arith.mulf %20, %15 : vector<16x128xf32>
    %22 = vector.shape_cast %21 : vector<16x128xf32> to vector<2x8x128xf32>
    %cst_10 = arith.constant dense<0.000000e+00> : vector<8x128xf32>
    %23 = vector.multi_reduction <add>, %22, %cst_10 [0] : vector<2x8x128xf32> to vector<8x128xf32>
    %24 = arith.addf %3, %23 : vector<8x128xf32>
    %c0_11 = arith.constant 0 : index
    %c0_12 = arith.constant 0 : index
    %c0_13 = arith.constant 0 : index
    %25 = vector.load %arg4[%c0_11, %c0_12, %c0_13] : memref<1x8x128xf32, #tpu.memory_space<vmem>>, vector<1x8x128xf32>
    %26 = vector.shape_cast %25 : vector<1x8x128xf32> to vector<8x128xf32>
    %27 = arith.addf %26, %24 : vector<8x128xf32>
    %c0_14 = arith.constant 0 : index
    %c0_15 = arith.constant 0 : index
    %c0_16 = arith.constant 0 : index
    %28 = vector.load %arg4[%c0_14, %c0_15, %c0_16] : memref<1x8x128xf32, #tpu.memory_space<vmem>>, vector<1x8x128xf32>
    %29 = vector.shape_cast %28 : vector<1x8x128xf32> to vector<8x128xf32>
    %30 = vector.shape_cast %27 : vector<8x128xf32> to vector<1x8x128xf32>
    tpu.vector_store %arg4[%c0_14, %c0_15, %c0_16], %30 {strides = array<i32>} : memref<1x8x128xf32, #tpu.memory_space<vmem>>, vector<1x8x128xf32>,
    return
  }
  func.func @transform_0(%arg0: i32, %arg1: i32) -> (i32, i32) {
    %c1_i32 = arith.constant 1 : i32
    %0 = arith.muli %arg0, %c1_i32 : i32
    %1 = arith.addi %0, %arg1 : i32
    %c0_i32 = arith.constant 0 : i32
    %c0_i32_0 = arith.constant 0 : i32
    return %1, %c0_i32 : i32, i32
  }
  func.func @transform_1(%arg0: i32, %arg1: i32) -> (i32, i32) {
    %c1_i32 = arith.constant 1 : i32
    %0 = arith.muli %arg0, %c1_i32 : i32
    %1 = arith.addi %0, %arg1 : i32
    %c0_i32 = arith.constant 0 : i32
    %c0_i32_0 = arith.constant 0 : i32
    return %1, %c0_i32 : i32, i32
  }
  func.func @transform_2(%arg0: i32, %arg1: i32) -> (i32, i32, i32) {
    %c0_i32 = arith.constant 0 : i32
    %c0_i32_0 = arith.constant 0 : i32
    %c0_i32_1 = arith.constant 0 : i32
    return %arg0, %c0_i32, %c0_i32_0 : i32, i32, i32
  }
}

</mosaic_0001>

<bundles_post_ra>
// kernel: tpu_custom_call.1
= control target key start
LH: loop header
LB: loop body
LE: loop exit
PB: predicated region body
PF: predicated region fallthrough
CT: control target
= control target key end

     0   :  { %7 = vsyncpa [#allocation3], 0  ;;  %s242_s0 = inlined_call_operand.hbm [shape: f32[16,128], index: 0, kind: input, shape index: {}]   ;;  %s243_s1 = inlined_call_operand.hbm [shape: f32[16,128], index: 1, kind: input, shape index: {}]   ;;  %s244_s2 = inlined_call_operand.hbm [shape: f32[1,8,128], index: 2, kind: output, shape index: {}]  }
   0x1   :  { %8 = vsyncpa [#allocation6], 0 }
   0x2   :  { %9 = vsyncpa [#allocation4], 0  ;;  %s186_s9 = smov [#allocation2]   ;;  %s114_s13 = scalar_lea.hbm %s242_s0, 256 }
   0x3   :  { %s19_s10 = sshll.u32 %s186_s9, 4  ;;  %p115_p0 = scmp.ne.s32.totalorder %s242_s0, %s114_s13  ;;  %s20_s10 = int_to_ptr.vmem [resolvable:$true] %s19_s10 }
   0x4   :  { %p118_p1 = scmp.lt.u32.totalorder %s114_s13, %s242_s0 }
   0x6   :  { %p120_p2 = pnand %p118_p1, %p115_p0 }
   0x8   :  { %123 = shalt.err (!%p120_p2)
}
   0x9   :  { %s124_s18 = scalar_lea.vmem %s20_s10, 256  ;;  %p129_p4 = scmp.lt.s32.totalorder %s20_s10, %s20_s10 }
   0xa   :  { %p125_p3 = scmp.ne.s32.totalorder %s20_s10, %s124_s18  ;;  %p130_p5 = scmp.lt.s32.totalorder %s124_s18, %s124_s18 }
   0xc   :  { %p131_p6 = por %p130_p5, %p129_p4 }
   0xe   :  { %p132_p7 = pnand %p131_p6, %p125_p3 }
  0x10   :  { %135 = shalt.err (!%p132_p7)
}
  0x11   :  { %s187_s19 = smov 128   ;;  %s188_s20 = smov 8  }
  0x12   :  { %25 = dma.hbm_to_vmem [thread:$0]  %s242_s0, 256, %s20_s10, [#allocation3], %s187_s19, %s187_s19, %s188_s20  }
  0x13   :  { %s189_s23 = smov [#allocation5]   ;;  %s136_s27 = scalar_lea.hbm %s243_s1, 256 }
  0x14   :  { %s35_s24 = sshll.u32 %s189_s23, 4  ;;  %p137_p8 = scmp.ne.s32.totalorder %s243_s1, %s136_s27  ;;  %s36_s24 = int_to_ptr.vmem [resolvable:$true] %s35_s24 }
  0x15   :  { %p140_p9 = scmp.lt.u32.totalorder %s136_s27, %s243_s1 }
  0x17   :  { %p142_p10 = pnand %p140_p9, %p137_p8 }
  0x19   :  { %145 = shalt.err (!%p142_p10)
}
  0x1a   :  { %s146_s4 = scalar_lea.vmem %s36_s24, 256  ;;  %p151_p12 = scmp.lt.s32.totalorder %s36_s24, %s36_s24 }
  0x1b   :  { %p147_p11 = scmp.ne.s32.totalorder %s36_s24, %s146_s4  ;;  %p152_p13 = scmp.lt.s32.totalorder %s146_s4, %s146_s4 }
  0x1d   :  { %p153_p0 = por %p152_p13, %p151_p12 }
  0x1f   :  { %p154_p1 = pnand %p153_p0, %p147_p11 }
  0x21   :  { %157 = shalt.err (!%p154_p1)
}
  0x22   :  { %41 = dma.hbm_to_vmem [thread:$0]  %s243_s1, 256, %s36_s24, [#allocation6], %s187_s19, %s187_s19, %s188_s20  }
  0x23   :  { %180 = dma.done.wait [#allocation3], 256  }
  0x24   :  { %181 = vsyncadd [#allocation3], 4294967040 }
  0x25   :  { %182 = dma.done.wait [#allocation6], 256  }
  0x26   :  { %183 = vsyncadd [#allocation6], 4294967040  ;;  %v57_v0 = vld [vmem:[#allocation2] sm:$0xff]  ;;  %v58_v1 = vld [vmem:[#allocation2 + $0x8] sm:$0xff]  ;;  %s190_s1 = smov [#allocation7]  }
  0x27   :  { %v59_v2 = vld [vmem:[#allocation5] sm:$0xff]  ;;  %v60_v3 = vld [vmem:[#allocation5 + $0x8] sm:$0xff]  ;;  %v63_v4 = vsub.f32 1.0, %v57_v0  ;;  %v64_v5 = vsub.f32 1.0, %v58_v1  ;;  %s94_s6 = sshll.u32 %s190_s1, 4  ;;  %s95_s6 = int_to_ptr.vmem [resolvable:$true] %s94_s6 }
  0x28   :  { %vm61_vm0 = vcmp.ge.f32.partialorder %v59_v2, 0.5  ;;  %vm62_vm1 = vcmp.ge.f32.partialorder %v60_v3, 0.5  ;;  %s158_s7 = scalar_lea.vmem %s95_s6, 128  ;;  %p163_p3 = scmp.lt.s32.totalorder %s95_s6, %s95_s6 }
  0x29   :  { %v65_v6 = vsel %vm61_vm0, %v57_v0, %v63_v4  ;;  %v66_v7 = vsel %vm62_vm1, %v58_v1, %v64_v5  ;;  %p159_p2 = scmp.ne.s32.totalorder %s95_s6, %s158_s7  ;;  %p164_p4 = scmp.lt.s32.totalorder %s158_s7, %s158_s7 }
  0x2a   :  { %110 = vlog2.f32 %v65_v6  ;;  %v75_v8 = vsub.f32 1.0, %v65_v6  ;;  %v76_v9 = vsub.f32 1.0, %v66_v7 }
  0x2b   :  { %112 = vlog2.f32 %v66_v7  ;;  %p165_p5 = por %p164_p4, %p163_p3 }
  0x2c   :  { %v77_v10 = vmul.f32 %v75_v8, %v75_v8  ;;  %v78_v12 = vmul.f32 %v76_v9, %v76_v9 }
  0x2d   :  { %p166_p6 = pnand %p165_p5, %p159_p2 }
  0x2e   :  { %v79_v17 = vmul.f32 0.25, %v77_v10  ;;  %v80_v19 = vmul.f32 0.25, %v78_v12 }
  0x34   :  { %v111_v11 = vpop.eup %110 }
  0x35   :  { %v113_v13 = vpop.eup %112  ;;  %v68_v14 = vmul.f32 0.6931472, %v111_v11 }
  0x36   :  { %v70_v15 = vmul.f32 0.6931472, %v113_v13 }
  0x37   :  { %v71_v16 = vmax.f32 %v68_v14, -100.0 }
  0x38   :  { %v72_v18 = vmax.f32 %v70_v15, -100.0 }
  0x39   :  { %v73_v20 = vsub.f32 0.0, %v71_v16 }
  0x3a   :  { %v74_v21 = vsub.f32 0.0, %v72_v18 }
  0x3b   :  { %v81_v22 = vmul.f32 %v79_v17, %v73_v20 }
  0x3c   :  { %v82_v23 = vmul.f32 %v80_v19, %v74_v21 }
  0x3e   :  { %v83_v24 = vadd.f32 %v82_v23, %v81_v22 }
  0x40   :  { %87 = vst [vmem:[#allocation7] sm:$0xff] %v83_v24 }
  0x41   :  { %169 = shalt.err (!%p166_p6)
}
  0x42   :  { %s170_s10 = scalar_lea.hbm %s244_s2, 128 }
  0x43   :  { %p171_p7 = scmp.ne.s32.totalorder %s244_s2, %s170_s10  ;;  %p174_p8 = scmp.lt.u32.totalorder %s170_s10, %s244_s2 }
  0x45   :  { %p176_p9 = pnand %p174_p8, %p171_p7 }
  0x47   :  { %179 = shalt.err (!%p176_p9)
}
  0x48   :  { %97 = dma.vmem_to_hbm [thread:$0]  %s95_s6, 128, %s244_s2, [#allocation4]  }
  0x49   :  { %184 = dma.done.wait [#allocation4], 128  }
  0x4a   :  { %185 = vsyncadd [#allocation4], 4294967168 }
  0x4b   :  { %101 = vsyncpa [#allocation3], 1 }
  0x4c   :  { %102 = vsyncpa [#allocation6], 1 }
  0x4d   :  { %103 = vsyncpa [#allocation4], 1 }

</bundles_post_ra>
